<compile_context>
chip_gen: v5e
topology: v5e:2x2
jax: 0.10.0
libtpu: 0.0.40
codegen_flags: <defaults>
</compile_context>

<pallas_src>
import jax
import jax.numpy as jnp
from jax import lax
from jax.experimental import pallas as pl
from jax.experimental.pallas import tpu as pltpu


def _round_up(x, m):
    return ((x + m - 1) // m) * m


def _pick_tile(n_pad, preferred):
    """Largest power-of-two tile <= preferred that divides n_pad (n_pad % 128 == 0)."""
    t = preferred
    while t > 128 and (n_pad % t) != 0:
        t //= 2
    return max(128, min(t, n_pad))


# ---------------- Stage 1: GCN layer + relu ----------------
def _gcn_relu_kernel(a_ref, x_ref, wt_ref, b_ref, z_ref):
    # AX = A_tile @ X                         (tm1, nhid_pad)
    ax = jnp.dot(a_ref[...], x_ref[...], preferred_element_type=jnp.float32)
    # S  = AX @ W^T + b  (W^T pre-transposed in the wrapper -> no in-kernel .T)
    s = jnp.dot(ax, wt_ref[...], preferred_element_type=jnp.float32) + b_ref[...]
    # Z = relu(S); dropout (eval) = identity
    z_ref[...] = jnp.maximum(s, 0.0)


# ---------------- Stage 2: OUT = Z @ Z^T ----------------
def _gram_kernel(zl_ref, zr_ref, out_ref):
    # Contract the feature axis of both row-blocks: no transpose materialized.
    out_ref[...] = lax.dot_general(
        zl_ref[...], zr_ref[...],
        dimension_numbers=(((1,), (1,)), ((), ())),
        preferred_element_type=jnp.float32)


def structure_decoder_pallas(x, weight, bias, a_hat):
    """x: (N, nhid) f32, weight: (nhid, nhid) f32 (PyG Linear weight, out x in),
    bias: (nhid,) f32, a_hat: (N, N) f32 normalized adjacency."""
    n, nhid = x.shape
    n_pad = _round_up(n, 128)
    nhid_pad = _round_up(nhid, 128)

    # Zero-pad to MXU/lane-friendly shapes (sliced back at the end).
    x_p = jnp.zeros((n_pad, nhid_pad), jnp.float32).at[:n, :nhid].set(x)
    wt_p = jnp.zeros((nhid_pad, nhid_pad), jnp.float32).at[:nhid, :nhid].set(weight.T)
    b_p = jnp.zeros((1, nhid_pad), jnp.float32).at[0, :nhid].set(bias)
    a_p = jnp.zeros((n_pad, n_pad), jnp.float32).at[:n, :n].set(a_hat)

    # ---- Stage 1: Z = relu((A_hat @ X) @ W^T + b), row-tiled over A_hat ----
    tm1 = _pick_tile(n_pad, 256)
    z_p = pl.pallas_call(
        _gcn_relu_kernel,
        out_shape=jax.ShapeDtypeStruct((n_pad, nhid_pad), jnp.float32),
        grid_spec=pltpu.PrefetchScalarGridSpec(
            num_scalar_prefetch=0,
            grid=(n_pad // tm1,),
            in_specs=[
                pl.BlockSpec((tm1, n_pad), lambda i: (i, 0)),        # A_hat row block
                pl.BlockSpec((n_pad, nhid_pad), lambda i: (0, 0)),   # X (resident)
                pl.BlockSpec((nhid_pad, nhid_pad), lambda i: (0, 0)),# W^T (resident)
                pl.BlockSpec((1, nhid_pad), lambda i: (0, 0)),       # bias
            ],
            out_specs=pl.BlockSpec((tm1, nhid_pad), lambda i: (i, 0)),
        ),
        compiler_params=pltpu.CompilerParams(
            dimension_semantics=("parallel",)),
    )(a_p, x_p, wt_p, b_p)

    # ---- Stage 2: OUT = Z @ Z^T, 2-D output grid, lane-dense (tm, tn) tiles ----
    tm = _pick_tile(n_pad, 512)
    tn = _pick_tile(n_pad, 512)
    out_p = pl.pallas_call(
        _gram_kernel,
        out_shape=jax.ShapeDtypeStruct((n_pad, n_pad), jnp.float32),
        grid_spec=pltpu.PrefetchScalarGridSpec(
            num_scalar_prefetch=0,
            grid=(n_pad // tm, n_pad // tn),
            in_specs=[
                pl.BlockSpec((tm, nhid_pad), lambda i, j: (i, 0)),   # Z row block (rows i)
                pl.BlockSpec((tn, nhid_pad), lambda i, j: (j, 0)),   # Z row block (rows j)
            ],
            out_specs=pl.BlockSpec((tm, tn), lambda i, j: (i, j)),
        ),
        compiler_params=pltpu.CompilerParams(
            dimension_semantics=("parallel", "parallel")),
    )(z_p, z_p)

    return out_p[:n, :n]


def build_normalized_adjacency(edge_index, num_nodes):
    """Dense D^-1/2 (A + I) D^-1/2 from a (2, E) int edge_index (glue, plain JAX)."""
    src, dst = edge_index[0], edge_index[1]
    a = jnp.zeros((num_nodes, num_nodes), jnp.float32)
    a = a.at[src, dst].set(1.0)
    a = a + jnp.eye(num_nodes, dtype=jnp.float32)          # add self-loops
    deg = jnp.sum(a, axis=1)
    d_inv_sqrt = jnp.where(deg > 0, 1.0 / jnp.sqrt(deg), 0.0)
    return a * d_inv_sqrt[:, None] * d_inv_sqrt[None, :]


def reference_forward(x, weight, bias, a_hat):
    h = x @ weight.T
    s = a_hat @ h + bias[None, :]
    z = jnp.maximum(s, 0.0)
    return z @ z.T


if __name__ == "__main__":
    key = jax.random.PRNGKey(0)
    N, NHID = 16, 32  # small shapes consistent with the module (nhid hidden features)

    k1, k2, k3, k4 = jax.random.split(key, 4)
    x = jax.random.normal(k1, (N, NHID), jnp.float32)
    weight = jax.random.normal(k2, (NHID, NHID), jnp.float32) * (1.0 / jnp.sqrt(NHID))
    bias = jax.random.normal(k3, (NHID,), jnp.float32) * 0.1

    # deterministic random sparse graph (directed edges; symmetrize)
    num_edges = 40
    src = jax.random.randint(k4, (num_edges,), 0, N)
    dst = jax.random.randint(jax.random.fold_in(k4, 1), (num_edges,), 0, N)
    edge_index = jnp.stack(
        [jnp.concatenate([src, dst]), jnp.concatenate([dst, src])], axis=0
    ).astype(jnp.int32)

    a_hat = build_normalized_adjacency(edge_index, N)

    out = structure_decoder_pallas(x, weight, bias, a_hat)
    out = jax.block_until_ready(out)

    ref = reference_forward(x, weight, bias, a_hat)
    assert out.shape == (N, N)
    assert jnp.allclose(out, ref, atol=1e-4, rtol=1e-4), "mismatch vs reference"

    print("KERNEL_OK")
</pallas_src>

<mosaic_0001>
module attributes {stable_mosaic.version = 11 : i64} {
  func.func @_gcn_relu_kernel(%arg0: i32, %arg1: memref<128x128xf32, #tpu.memory_space<vmem>>, %arg2: memref<128x128xf32, #tpu.memory_space<vmem>>, %arg3: memref<128x128xf32, #tpu.memory_space<vmem>>, %arg4: memref<1x128xf32, #tpu.memory_space<vmem>>, %arg5: memref<128x128xf32, #tpu.memory_space<vmem>>) attributes {dimension_semantics = [#tpu.dimension_semantics<parallel>], iteration_bounds = array<i64: 1>, scalar_prefetch = 0 : i64, scratch_operands = 0 : i64, tpu.core_type = #tpu.core_type<tc>, window_params = [{transform_indices = @transform_0, window_bounds = array<i64: 128, 128>}, {pipeline_mode = #tpu.pipeline_mode<synchronous>, transform_indices = @transform_1, window_bounds = array<i64: 128, 128>}, {pipeline_mode = #tpu.pipeline_mode<synchronous>, transform_indices = @transform_2, window_bounds = array<i64: 128, 128>}, {pipeline_mode = #tpu.pipeline_mode<synchronous>, transform_indices = @transform_3, window_bounds = array<i64: 1, 128>}, {transform_indices = @transform_4, window_bounds = array<i64: 128, 128>}]} {
    %c0 = arith.constant 0 : index
    %c0_0 = arith.constant 0 : index
    %0 = vector.load %arg1[%c0, %c0_0] : memref<128x128xf32, #tpu.memory_space<vmem>>, vector<128x128xf32>
    %c0_1 = arith.constant 0 : index
    %c0_2 = arith.constant 0 : index
    %1 = vector.load %arg2[%c0_1, %c0_2] : memref<128x128xf32, #tpu.memory_space<vmem>>, vector<128x128xf32>
    %cst = arith.constant dense<0.000000e+00> : vector<128x128xf32>
    %2 = tpu.matmul %0, %1, %cst {dimension_numbers = #tpu.dot_dimension_numbers<[1], [0], [0], [1], [0, 0, 1, 1], [], []>} : vector<128x128xf32>, vector<128x128xf32>, vector<128x128xf32> -> vector<128x128xf32>
    %c0_3 = arith.constant 0 : index
    %c0_4 = arith.constant 0 : index
    %3 = vector.load %arg3[%c0_3, %c0_4] : memref<128x128xf32, #tpu.memory_space<vmem>>, vector<128x128xf32>
    %cst_5 = arith.constant dense<0.000000e+00> : vector<128x128xf32>
    %4 = tpu.matmul %2, %3, %cst_5 {dimension_numbers = #tpu.dot_dimension_numbers<[1], [0], [0], [1], [0, 0, 1, 1], [], []>} : vector<128x128xf32>, vector<128x128xf32>, vector<128x128xf32> -> vector<128x128xf32>
    %c0_6 = arith.constant 0 : index
    %c0_7 = arith.constant 0 : index
    %5 = vector.load %arg4[%c0_6, %c0_7] : memref<1x128xf32, #tpu.memory_space<vmem>>, vector<1x128xf32>
    %6 = vector.broadcast %5 : vector<1x128xf32> to vector<128x128xf32>
    %7 = arith.addf %4, %6 : vector<128x128xf32>
    %cst_8 = arith.constant 0.000000e+00 : f32
    %8 = vector.broadcast %cst_8 : f32 to vector<128x128xf32>
    %9 = arith.maximumf %7, %8 : vector<128x128xf32>
    %c0_9 = arith.constant 0 : index
    %c0_10 = arith.constant 0 : index
    %10 = vector.load %arg5[%c0_9, %c0_10] : memref<128x128xf32, #tpu.memory_space<vmem>>, vector<128x128xf32>
    tpu.vector_store %arg5[%c0_9, %c0_10], %9 {strides = array<i32>} : memref<128x128xf32, #tpu.memory_space<vmem>>, vector<128x128xf32>,
    return
  }
  func.func @transform_0(%arg0: i32) -> (i32, i32) {
    %c0_i32 = arith.constant 0 : i32
    %c0_i32_0 = arith.constant 0 : i32
    return %arg0, %c0_i32 : i32, i32
  }
  func.func @transform_1(%arg0: i32) -> (i32, i32) {
    %c0_i32 = arith.constant 0 : i32
    %c0_i32_0 = arith.constant 0 : i32
    %c0_i32_1 = arith.constant 0 : i32
    return %c0_i32, %c0_i32_0 : i32, i32
  }
  func.func @transform_2(%arg0: i32) -> (i32, i32) {
    %c0_i32 = arith.constant 0 : i32
    %c0_i32_0 = arith.constant 0 : i32
    %c0_i32_1 = arith.constant 0 : i32
    return %c0_i32, %c0_i32_0 : i32, i32
  }
  func.func @transform_3(%arg0: i32) -> (i32, i32) {
    %c0_i32 = arith.constant 0 : i32
    %c0_i32_0 = arith.constant 0 : i32
    %c0_i32_1 = arith.constant 0 : i32
    return %c0_i32, %c0_i32_0 : i32, i32
  }
  func.func @transform_4(%arg0: i32) -> (i32, i32) {
    %c0_i32 = arith.constant 0 : i32
    %c0_i32_0 = arith.constant 0 : i32
    return %arg0, %c0_i32 : i32, i32
  }
}

</mosaic_0001>

<bundles_post_ra>
// kernel: tpu_custom_call.1
= control target key start
LH: loop header
LB: loop body
LE: loop exit
PB: predicated region body
PF: predicated region fallthrough
CT: control target
= control target key end

     0   :  { %9 = vsyncpa [#allocation3], 0  ;;  %s516_s0 = inlined_call_operand.hbm [shape: f32[128,128], index: 0, kind: input, shape index: {}]   ;;  %s517_s1 = inlined_call_operand.hbm [shape: f32[128,128], index: 1, kind: input, shape index: {}]   ;;  %s518_s2 = inlined_call_operand.hbm [shape: f32[128,128], index: 2, kind: input, shape index: {}]   ;;  %s519_s3 = inlined_call_operand.vmem [shape: f32[1,128], index: 3, kind: input, shape index: {}]   ;;  %s520_s4 = inlined_call_operand.hbm [shape: f32[128,128], index: 4, kind: output, shape index: {}]  }
   0x1   :  { %10 = vsyncpa [#allocation6], 0 }
   0x2   :  { %11 = vsyncpa [#allocation4], 0  ;;  %s29_s17 = sshll.u32 %s517_s1, 4  ;;  %s440_s18 = smov [#allocation5]   ;;  %s30_s17 = int_to_ptr.hbm [resolvable:$true] %s29_s17 }
   0x3   :  { %s31_s19 = sshll.u32 %s440_s18, 4  ;;  %s16_s22 = sshll.u32 %s516_s0, 4  ;;  %s32_s19 = int_to_ptr.vmem [resolvable:$true] %s31_s19  ;;  %s17_s22 = int_to_ptr.hbm [resolvable:$true] %s16_s22 }
   0x4   :  { %s441_s23 = smov 128   ;;  %s442_s24 = smov 8  }
   0x5   :  { %37 = dma.hbm_to_vmem [thread:$0]  %s30_s17, 2048, %s32_s19, [#allocation6], %s441_s23, %s441_s23, %s442_s24  }
   0x6   :  { %s443_s25 = smov [#allocation2]   ;;  %s42_s1 = sshll.u32 %s518_s2, 4  ;;  %s43_s1 = int_to_ptr.hbm [resolvable:$true] %s42_s1 }
   0x7   :  { %s18_s26 = sshll.u32 %s443_s25, 4  ;;  %s444_s0 = smov [#allocation7]   ;;  %s19_s26 = int_to_ptr.vmem [resolvable:$true] %s18_s26 }
   0x8   :  { %24 = dma.hbm_to_vmem [thread:$0]  %s17_s22, 2048, %s19_s26, [#allocation3], %s441_s23, %s441_s23, %s442_s24  }
   0x9   :  { %s44_s29 = sshll.u32 %s444_s0, 4  ;;  %s45_s29 = int_to_ptr.vmem [resolvable:$true] %s44_s29 }
   0xa   :  { %50 = dma.hbm_to_vmem [thread:$0]  %s43_s1, 2048, %s45_s29, [#allocation6], %s441_s23, %s441_s23, %s442_s24  }
   0xb   :  { %434 = dma.done.wait [#allocation3], 2048  }
   0xc   :  { %435 = vsyncadd [#allocation3], 4294965248 }
   0xd   :  { %436 = dma.done.wait [#allocation6], 4096  }
   0xe   :  { %437 = vsyncadd [#allocation6], 4294963200  ;;  %v96_v0 = vld [vmem:[#allocation5 + $0x78] sm:$0xff]  ;;  %v95_v1 = vld [vmem:[#allocation5 + $0x70] sm:$0xff]  ;;  %s285_s8 = sshll.u32 %s520_s4, 4  ;;  %s286_s8 = int_to_ptr.hbm [resolvable:$true] %s285_s8 }
   0xf   :  { %299 = vmatpush.msra.mxu2 %v96_v0  ;;  %97 = vmatpush.msra.mxu0 %v96_v0  ;;  %v94_v2 = vld [vmem:[#allocation5 + $0x68] sm:$0xff]  ;;  %v93_v3 = vld [vmem:[#allocation5 + $0x60] sm:$0xff]  ;;  %v92_v4 = vld [vmem:[#allocation5 + $0x58] sm:$0xff] }
  0x10   :  { %v91_v5 = vld [vmem:[#allocation5 + $0x50] sm:$0xff]  ;;  %v90_v6 = vld [vmem:[#allocation5 + $0x48] sm:$0xff]  ;;  %v89_v7 = vld [vmem:[#allocation5 + $0x40] sm:$0xff] }
  0x11   :  { %300 = vmatpush.msra.mxu2 %v95_v1  ;;  %98 = vmatpush.msra.mxu0 %v95_v1  ;;  %v88_v8 = vld [vmem:[#allocation5 + $0x38] sm:$0xff]  ;;  %v87_v9 = vld [vmem:[#allocation5 + $0x30] sm:$0xff]  ;;  %v86_v10 = vld [vmem:[#allocation5 + $0x28] sm:$0xff] }
  0x12   :  { %v85_v11 = vld [vmem:[#allocation5 + $0x20] sm:$0xff]  ;;  %v84_v12 = vld [vmem:[#allocation5 + $0x18] sm:$0xff]  ;;  %v83_v13 = vld [vmem:[#allocation5 + $0x10] sm:$0xff] }
  0x13   :  { %301 = vmatpush.msra.mxu2 %v94_v2  ;;  %99 = vmatpush.msra.mxu0 %v94_v2  ;;  %v82_v14 = vld [vmem:[#allocation5 + $0x8] sm:$0xff]  ;;  %v81_v15 = vld [vmem:[#allocation5] sm:$0xff]  ;;  %v75_v20 = vld [vmem:[#allocation2 + $0x50] sm:$0xff] }
  0x14   :  { %v73_v16 = vld [vmem:[#allocation2 + $0x40] sm:$0xff]  ;;  %v74_v18 = vld [vmem:[#allocation2 + $0x48] sm:$0xff]  ;;  %v67_v21 = vld [vmem:[#allocation2 + $0x10] sm:$0xff] }
  0x15   :  { %302 = vmatpush.msra.mxu2 %v93_v3  ;;  %100 = vmatpush.msra.mxu0 %v93_v3  ;;  %v65_v17 = vld [vmem:[#allocation2] sm:$0xff]  ;;  %v66_v19 = vld [vmem:[#allocation2 + $0x8] sm:$0xff]  ;;  %v76_v22 = vld [vmem:[#allocation2 + $0x58] sm:$0xff] }
  0x16   :  { %v68_v23 = vld [vmem:[#allocation2 + $0x18] sm:$0xff]  ;;  %v176_v25 = vld [vmem:[#allocation7 + $0x70] sm:$0xff]  ;;  %v175_v26 = vld [vmem:[#allocation7 + $0x68] sm:$0xff] }
  0x17   :  { %303 = vmatpush.msra.mxu2 %v92_v4  ;;  %101 = vmatpush.msra.mxu0 %v92_v4  ;;  %v177_v24 = vld [vmem:[#allocation7 + $0x78] sm:$0xff]  ;;  %v174_v27 = vld [vmem:[#allocation7 + $0x60] sm:$0xff]  ;;  %v172_v31 = vld [vmem:[#allocation7 + $0x50] sm:$0xff] }
  0x18   :  { %315 = vmatpush.msra.mxu3 %v177_v24  ;;  %182 = vmatpush.msra.mxu1 %v177_v24  ;;  %v77_v28 = vld [vmem:[#allocation2 + $0x60] sm:$0xff]  ;;  %v173_v30 = vld [vmem:[#allocation7 + $0x58] sm:$0xff]  ;;  %v171_v32 = vld [vmem:[#allocation7 + $0x48] sm:$0xff] }
  0x19   :  { %304 = vmatpush.msra.mxu2 %v91_v5  ;;  %102 = vmatpush.msra.mxu0 %v91_v5  ;;  %v69_v29 = vld [vmem:[#allocation2 + $0x20] sm:$0xff]  ;;  %v78_v34 = vld [vmem:[#allocation2 + $0x68] sm:$0xff]  ;;  %v169_v36 = vld [vmem:[#allocation7 + $0x38] sm:$0xff] }
  0x1a   :  { %316 = vmatpush.msra.mxu3 %v176_v25  ;;  %183 = vmatpush.msra.mxu1 %v176_v25  ;;  %v170_v33 = vld [vmem:[#allocation7 + $0x40] sm:$0xff]  ;;  %v70_v35 = vld [vmem:[#allocation2 + $0x28] sm:$0xff]  ;;  %v168_v37 = vld [vmem:[#allocation7 + $0x30] sm:$0xff] }
  0x1b   :  { %305 = vmatpush.msra.mxu2 %v90_v6  ;;  %103 = vmatpush.msra.mxu0 %v90_v6  ;;  %v167_v38 = vld [vmem:[#allocation7 + $0x28] sm:$0xff]  ;;  %v166_v39 = vld [vmem:[#allocation7 + $0x20] sm:$0xff]  ;;  %v79_v40 = vld [vmem:[#allocation2 + $0x70] sm:$0xff] }
  0x1c   :  { %317 = vmatpush.msra.mxu3 %v175_v26  ;;  %184 = vmatpush.msra.mxu1 %v175_v26  ;;  %v71_v41 = vld [vmem:[#allocation2 + $0x30] sm:$0xff]  ;;  %v165_v42 = vld [vmem:[#allocation7 + $0x18] sm:$0xff]  ;;  %v163_v44 = vld [vmem:[#allocation7 + $0x8] sm:$0xff] }
  0x1d   :  { %306 = vmatpush.msra.mxu2 %v89_v7  ;;  %104 = vmatpush.msra.mxu0 %v89_v7  ;;  %v164_v43 = vld [vmem:[#allocation7 + $0x10] sm:$0xff]  ;;  %v80_v45 = vld [vmem:[#allocation2 + $0x78] sm:$0xff]  ;;  %v162_v47 = vld [vmem:[#allocation7] sm:$0xff] }
  0x1e   :  { %318 = vmatpush.msra.mxu3 %v174_v27  ;;  %185 = vmatpush.msra.mxu1 %v174_v27  ;;  %v72_v46 = vld [vmem:[#allocation2 + $0x38] sm:$0xff]  ;;  %v492_v0 = vld [vmem:[%s519_s3] ss:$0 sm:$0xff]  ;;  %s445_s3 = smov [#allocation8]  }
  0x1f   :  { %307 = vmatpush.msra.mxu2 %v88_v8  ;;  %105 = vmatpush.msra.mxu0 %v88_v8  ;;  %s283_s5 = sshll.u32 %s445_s3, 4  ;;  %s284_s5 = int_to_ptr.vmem [resolvable:$true] %s283_s5 }
  0x20   :  { %319 = vmatpush.msra.mxu3 %v173_v30  ;;  %186 = vmatpush.msra.mxu1 %v173_v30 }
  0x21   :  { %308 = vmatpush.msra.mxu2 %v87_v9  ;;  %106 = vmatpush.msra.mxu0 %v87_v9 }
  0x22   :  { %320 = vmatpush.msra.mxu3 %v172_v31  ;;  %187 = vmatpush.msra.mxu1 %v172_v31 }
  0x23   :  { %309 = vmatpush.msra.mxu2 %v86_v10  ;;  %107 = vmatpush.msra.mxu0 %v86_v10 }
  0x24   :  { %321 = vmatpush.msra.mxu3 %v171_v32  ;;  %188 = vmatpush.msra.mxu1 %v171_v32 }
  0x25   :  { %310 = vmatpush.msra.mxu2 %v85_v11  ;;  %108 = vmatpush.msra.mxu0 %v85_v11 }
  0x26   :  { %322 = vmatpush.msra.mxu3 %v170_v33  ;;  %189 = vmatpush.msra.mxu1 %v170_v33 }
  0x27   :  { %311 = vmatpush.msra.mxu2 %v84_v12  ;;  %109 = vmatpush.msra.mxu0 %v84_v12 }
  0x28   :  { %323 = vmatpush.msra.mxu3 %v169_v36  ;;  %190 = vmatpush.msra.mxu1 %v169_v36 }
  0x29   :  { %312 = vmatpush.msra.mxu2 %v83_v13  ;;  %110 = vmatpush.msra.mxu0 %v83_v13 }
  0x2a   :  { %324 = vmatpush.msra.mxu3 %v168_v37  ;;  %191 = vmatpush.msra.mxu1 %v168_v37 }
  0x2b   :  { %313 = vmatpush.msra.mxu2 %v82_v14  ;;  %111 = vmatpush.msra.mxu0 %v82_v14 }
  0x2c   :  { %325 = vmatpush.msra.mxu3 %v167_v38  ;;  %192 = vmatpush.msra.mxu1 %v167_v38 }
  0x2d   :  { %314 = vmatpush.msra.mxu2 %v81_v15  ;;  %112 = vmatpush.msra.mxu0 %v81_v15 }
  0x2e   :  { %137 = vmatmul.f32.vlgmr.msra.gmra.mxu2 %v73_v16  ;;  %113 = vmatmul.f32.vlgmr.msra.gmra.mxu0 %v65_v17 }
  0x2f   :  { %326 = vmatpush.msra.mxu3 %v166_v39  ;;  %193 = vmatpush.msra.mxu1 %v166_v39 }
  0x31   :  { %327 = vmatpush.msra.mxu3 %v165_v42  ;;  %194 = vmatpush.msra.mxu1 %v165_v42 }
  0x33   :  { %328 = vmatpush.msra.mxu3 %v164_v43  ;;  %195 = vmatpush.msra.mxu1 %v164_v43 }
  0x35   :  { %329 = vmatpush.msra.mxu3 %v163_v44  ;;  %196 = vmatpush.msra.mxu1 %v163_v44 }
  0x36   :  { %140 = vmatmul.f32.gmra.mxu2 %v74_v18  ;;  %116 = vmatmul.f32.gmra.mxu0 %v66_v19 }
  0x37   :  { %330 = vmatpush.msra.mxu3 %v162_v47  ;;  %197 = vmatpush.msra.mxu1 %v162_v47 }
  0x3e   :  { %143 = vmatmul.f32.gmra.mxu2 %v75_v20  ;;  %119 = vmatmul.f32.gmra.mxu0 %v67_v21 }
  0x46   :  { %146 = vmatmul.f32.gmra.mxu2 %v76_v22  ;;  %122 = vmatmul.f32.gmra.mxu0 %v68_v23 }
  0x4e   :  { %149 = vmatmul.f32.gmra.mxu2 %v77_v28  ;;  %125 = vmatmul.f32.gmra.mxu0 %v69_v29 }
  0x56   :  { %152 = vmatmul.f32.gmra.mxu2 %v78_v34  ;;  %128 = vmatmul.f32.gmra.mxu0 %v70_v35 }
  0x5e   :  { %155 = vmatmul.f32.gmra.mxu2 %v79_v40  ;;  %131 = vmatmul.f32.gmra.mxu0 %v71_v41 }
  0x66   :  { %158 = vmatmul.f32.gmra.mxu2 %v80_v45  ;;  %134 = vmatmul.f32.gmra.mxu0 %v72_v46 }
  0xab   :  { %v114_v48 = vpop.f32.mrf.mxu0 }
  0xac   :  { %198 = vmatmul.f32.vlgmr.msra.gmra.mxu1 %v114_v48 }
  0xb1   :  { %v138_v49 = vpop.f32.mrf.mxu2 }
  0xb2   :  { %222 = vmatmul.f32.vlgmr.msra.gmra.mxu3 %v138_v49 }
  0xb3   :  { %v117_v50 = vpop.f32.mrf.mxu0 }
  0xb4   :  { %201 = vmatmul.f32.gmra.mxu1 %v117_v50 }
  0xb9   :  { %v141_v51 = vpop.f32.mrf.mxu2 }
  0xba   :  { %225 = vmatmul.f32.gmra.mxu3 %v141_v51 }
  0xbb   :  { %v120_v52 = vpop.f32.mrf.mxu0 }
  0xbc   :  { %204 = vmatmul.f32.gmra.mxu1 %v120_v52 }
  0xc1   :  { %v144_v53 = vpop.f32.mrf.mxu2 }
  0xc2   :  { %228 = vmatmul.f32.gmra.mxu3 %v144_v53 }
  0xc3   :  { %v123_v54 = vpop.f32.mrf.mxu0 }
  0xc4   :  { %207 = vmatmul.f32.gmra.mxu1 %v123_v54 }
  0xc9   :  { %v147_v55 = vpop.f32.mrf.mxu2 }
  0xca   :  { %231 = vmatmul.f32.gmra.mxu3 %v147_v55 }
  0xcb   :  { %v126_v56 = vpop.f32.mrf.mxu0 }
  0xcc   :  { %210 = vmatmul.f32.gmra.mxu1 %v126_v56 }
  0xd1   :  { %v150_v57 = vpop.f32.mrf.mxu2 }
  0xd2   :  { %234 = vmatmul.f32.gmra.mxu3 %v150_v57 }
  0xd3   :  { %v129_v58 = vpop.f32.mrf.mxu0 }
  0xd4   :  { %213 = vmatmul.f32.gmra.mxu1 %v129_v58 }
  0xd9   :  { %v153_v59 = vpop.f32.mrf.mxu2 }
  0xda   :  { %237 = vmatmul.f32.gmra.mxu3 %v153_v59 }
  0xdb   :  { %v132_v60 = vpop.f32.mrf.mxu0 }
  0xdc   :  { %216 = vmatmul.f32.gmra.mxu1 %v132_v60 }
  0xe1   :  { %v156_v61 = vpop.f32.mrf.mxu2 }
  0xe2   :  { %240 = vmatmul.f32.gmra.mxu3 %v156_v61 }
  0xe3   :  { %v135_v62 = vpop.f32.mrf.mxu0 }
  0xe4   :  { %219 = vmatmul.f32.gmra.mxu1 %v135_v62 }
  0xe9   :  { %v159_v63 = vpop.f32.mrf.mxu2 }
  0xea   :  { %243 = vmatmul.f32.gmra.mxu3 %v159_v63 }
 0x129   :  { %v199_v1 = vpop.f32.mrf.mxu1 }
 0x12a   :  { %v200_v2 = vadd.f32 %v492_v0, %v199_v1 }
 0x12c   :  { %v247_v3 = vmax.f32 %v200_v2, 0.0 }
 0x12e   :  { %263 = vst [vmem:[#allocation8] sm:$0xff] %v247_v3 }
 0x131   :  { %v202_v4 = vpop.f32.mrf.mxu1 }
 0x132   :  { %v203_v5 = vadd.f32 %v492_v0, %v202_v4 }
 0x134   :  { %v248_v6 = vmax.f32 %v203_v5, 0.0 }
 0x135   :  { %v223_v7 = vpop.f32.mrf.mxu3 }
 0x136   :  { %v224_v8 = vadd.f32 %v492_v0, %v223_v7  ;;  %264 = vst [vmem:[#allocation8 + $0x8] sm:$0xff] %v248_v6 }
 0x138   :  { %v255_v9 = vmax.f32 %v224_v8, 0.0 }
 0x139   :  { %v205_v10 = vpop.f32.mrf.mxu1 }
 0x13a   :  { %271 = vst [vmem:[#allocation8 + $0x40] sm:$0xff] %v255_v9  ;;  %v206_v11 = vadd.f32 %v492_v0, %v205_v10 }
 0x13c   :  { %v249_v12 = vmax.f32 %v206_v11, 0.0 }
 0x13d   :  { %v226_v13 = vpop.f32.mrf.mxu3 }
 0x13e   :  { %v227_v14 = vadd.f32 %v492_v0, %v226_v13  ;;  %265 = vst [vmem:[#allocation8 + $0x10] sm:$0xff] %v249_v12 }
 0x140   :  { %v256_v15 = vmax.f32 %v227_v14, 0.0 }
 0x141   :  { %v208_v16 = vpop.f32.mrf.mxu1 }
 0x142   :  { %272 = vst [vmem:[#allocation8 + $0x48] sm:$0xff] %v256_v15  ;;  %v209_v17 = vadd.f32 %v492_v0, %v208_v16 }
 0x144   :  { %v250_v18 = vmax.f32 %v209_v17, 0.0 }
 0x145   :  { %v229_v19 = vpop.f32.mrf.mxu3 }
 0x146   :  { %v230_v20 = vadd.f32 %v492_v0, %v229_v19  ;;  %266 = vst [vmem:[#allocation8 + $0x18] sm:$0xff] %v250_v18 }
 0x148   :  { %v257_v21 = vmax.f32 %v230_v20, 0.0 }
 0x149   :  { %v211_v22 = vpop.f32.mrf.mxu1 }
 0x14a   :  { %273 = vst [vmem:[#allocation8 + $0x50] sm:$0xff] %v257_v21  ;;  %v212_v23 = vadd.f32 %v492_v0, %v211_v22 }
 0x14c   :  { %v251_v24 = vmax.f32 %v212_v23, 0.0 }
 0x14d   :  { %v232_v25 = vpop.f32.mrf.mxu3 }
 0x14e   :  { %v233_v26 = vadd.f32 %v492_v0, %v232_v25  ;;  %267 = vst [vmem:[#allocation8 + $0x20] sm:$0xff] %v251_v24 }
 0x150   :  { %v258_v27 = vmax.f32 %v233_v26, 0.0 }
 0x151   :  { %v214_v28 = vpop.f32.mrf.mxu1 }
 0x152   :  { %274 = vst [vmem:[#allocation8 + $0x58] sm:$0xff] %v258_v27  ;;  %v215_v29 = vadd.f32 %v492_v0, %v214_v28 }
 0x154   :  { %v252_v30 = vmax.f32 %v215_v29, 0.0 }
 0x155   :  { %v235_v31 = vpop.f32.mrf.mxu3 }
 0x156   :  { %v236_v32 = vadd.f32 %v492_v0, %v235_v31  ;;  %268 = vst [vmem:[#allocation8 + $0x28] sm:$0xff] %v252_v30 }
 0x158   :  { %v259_v33 = vmax.f32 %v236_v32, 0.0 }
 0x159   :  { %v217_v34 = vpop.f32.mrf.mxu1 }
 0x15a   :  { %275 = vst [vmem:[#allocation8 + $0x60] sm:$0xff] %v259_v33  ;;  %v218_v35 = vadd.f32 %v492_v0, %v217_v34 }
 0x15c   :  { %v253_v36 = vmax.f32 %v218_v35, 0.0 }
 0x15d   :  { %v238_v37 = vpop.f32.mrf.mxu3 }
 0x15e   :  { %v239_v38 = vadd.f32 %v492_v0, %v238_v37  ;;  %269 = vst [vmem:[#allocation8 + $0x30] sm:$0xff] %v253_v36 }
 0x160   :  { %v260_v39 = vmax.f32 %v239_v38, 0.0 }
 0x161   :  { %v220_v40 = vpop.f32.mrf.mxu1 }
 0x162   :  { %276 = vst [vmem:[#allocation8 + $0x68] sm:$0xff] %v260_v39  ;;  %v221_v41 = vadd.f32 %v492_v0, %v220_v40 }
 0x164   :  { %v254_v42 = vmax.f32 %v221_v41, 0.0 }
 0x165   :  { %v241_v43 = vpop.f32.mrf.mxu3 }
 0x166   :  { %v242_v44 = vadd.f32 %v492_v0, %v241_v43  ;;  %270 = vst [vmem:[#allocation8 + $0x38] sm:$0xff] %v254_v42 }
 0x168   :  { %v261_v45 = vmax.f32 %v242_v44, 0.0 }
 0x16a   :  { %277 = vst [vmem:[#allocation8 + $0x70] sm:$0xff] %v261_v45 }
 0x16d   :  { %v244_v46 = vpop.f32.mrf.mxu3 }
 0x16e   :  { %v245_v47 = vadd.f32 %v492_v0, %v244_v46 }
 0x170   :  { %v262_v48 = vmax.f32 %v245_v47, 0.0 }
 0x172   :  { %278 = vst [vmem:[#allocation8 + $0x78] sm:$0xff] %v262_v48 }
 0x173   :  { %291 = dma.vmem_to_hbm [thread:$0]  %s284_s5, 2048, %s286_s8, [#allocation4], %s441_s23, %s441_s23, %s442_s24  }
 0x174   :  { %438 = dma.done.wait [#allocation4], 2048  }
 0x175   :  { %439 = vsyncadd [#allocation4], 4294965248 }
 0x176   :  { %296 = vsyncpa [#allocation3], 1 }
 0x177   :  { %297 = vsyncpa [#allocation6], 1 }
 0x178   :  { %298 = vsyncpa [#allocation4], 1 }

</bundles_post_ra>
